<compile_context>
chip_gen: v6e
topology: v6e:2x2x1
jax: 0.10.0
libtpu: 0.0.40
codegen_flags: <defaults>
</compile_context>

<pallas_src>
import functools

import jax
import jax.numpy as jnp
from jax import lax
from jax.experimental import pallas as pl
from jax.experimental.pallas import tpu as pltpu

WINDOW = 8  # window_size of the KeypointSampler
_VMEM_LIMIT = 32 * 1024 * 1024  # safe on v5e/v6e/v7x


def _pick_lane_tile(total, max_tile=8192):
    """Largest power-of-two multiple of 128 (<= max_tile) dividing `total`."""
    if total <= max_tile:
        return total
    t = max_tile
    while t >= 128:
        if total % t == 0:
            return t
        t //= 2
    return total


# ----------------------------------------------------------------------------
# gridify, transposed layout: [B, C, H, W] -> [B, C, w*w, N]  (N on lane axis)
#   element [b, c, k, n] with k = dy*w + dx, n = i*Wc + j  is  x[b, c, i*w+dy, j*w+dx]
# ----------------------------------------------------------------------------
def gridify_T(x, w):
    B, C, H, W = x.shape
    Hc, Wc = H // w, W // w
    x = x.reshape(B, C, Hc, w, Wc, w)
    x = jnp.transpose(x, (0, 1, 3, 5, 2, 4))       # [B, C, w, w, Hc, Wc]
    return x.reshape(B, C, w * w, Hc * Wc)


# ----------------------------------------------------------------------------
# Fused 1x1-conv heads (heatmap + coarse descriptors) — one MXU matmul
# ----------------------------------------------------------------------------
def _conv1x1_kernel(x_ref, w_ref, b_ref, o_ref):
    # x_ref: [1, Cin, T] bf16   w_ref: [Cout, Cin] bf16   b_ref: [Cout, 1] f32
    # o_ref: [1, Cout, T] f32
    acc = jnp.dot(w_ref[...], x_ref[0], preferred_element_type=jnp.float32)
    o_ref[0] = (acc + b_ref[...]).astype(o_ref.dtype)


def conv1x1_fused(x_flat, w, b):
    # x_flat: [B, Cin, HW] bf16,  w: [Cout, Cin] bf16,  b: [Cout, 1] f32
    B, Cin, HW = x_flat.shape
    Cout = w.shape[0]
    T = _pick_lane_tile(HW, max_tile=8192)
    return pl.pallas_call(
        _conv1x1_kernel,
        out_shape=jax.ShapeDtypeStruct((B, Cout, HW), jnp.float32),
        grid_spec=pltpu.PrefetchScalarGridSpec(
            num_scalar_prefetch=0,
            grid=(B, HW // T),
            in_specs=[
                pl.BlockSpec((1, Cin, T), lambda b_, t_: (b_, 0, t_)),
                pl.BlockSpec((Cout, Cin), lambda b_, t_: (0, 0)),
                pl.BlockSpec((Cout, 1), lambda b_, t_: (0, 0)),
            ],
            out_specs=pl.BlockSpec((1, Cout, T), lambda b_, t_: (b_, 0, t_)),
        ),
        compiler_params=pltpu.CompilerParams(
            dimension_semantics=("parallel", "parallel"),
            vmem_limit_bytes=_VMEM_LIMIT),
    )(x_flat, w, b)


# ----------------------------------------------------------------------------
# KeypointSampler + RIPE border filter (lane-dense: N is the lane axis)
# ----------------------------------------------------------------------------
def _detector_kernel(logits_ref, gumbel_ref, u2_ref,
                     kpts_ref, logp_ref, mask_ref, lsel_ref,
                     *, Wc, w, H, W, TN):
    tn = pl.program_id(1)
    logits = logits_ref[0]                                  # [WW, TN] f32
    WW = logits.shape[0]
    sub = lax.broadcasted_iota(jnp.int32, (WW, TN), 0)      # window-slot index k

    # ---- Categorical(logits).sample() via Gumbel-max over the sublane axis ----
    z = logits + gumbel_ref[0]
    z_max = jnp.max(z, axis=0, keepdims=True)               # [1, TN]
    choices = jnp.min(jnp.where(z == z_max, sub, WW), axis=0, keepdims=True)  # [1,TN] i32

    onehot = sub == choices
    logits_sel = jnp.sum(jnp.where(onehot, logits, 0.0), axis=0, keepdims=True)  # [1,TN]

    # Categorical log-prob = logits_selected - logsumexp(logits)
    l_max = jnp.max(logits, axis=0, keepdims=True)
    lse = l_max + jnp.log(jnp.sum(jnp.exp(logits - l_max), axis=0, keepdims=True))
    log_prob_cat = logits_sel - lse

    # ---- Bernoulli(logits_selected) acceptance (one uniform per window) ------
    u2 = u2_ref[0]                                          # [1, TN]
    p_accept = 1.0 / (1.0 + jnp.exp(-logits_sel))
    accepted = (u2 < p_accept).astype(jnp.float32)
    softplus = jnp.maximum(logits_sel, 0.0) + jnp.log1p(jnp.exp(-jnp.abs(logits_sel)))
    log_prob_bern = accepted * logits_sel - softplus

    logp_ref[0] = log_prob_cat + log_prob_bern

    # ---- keypoint coordinates (x, y): single lane-dense [2, TN] store --------
    n = lax.broadcasted_iota(jnp.int32, (1, TN), 1) + tn * TN   # global window index
    cell_i = n // Wc
    cell_j = n % Wc
    dy = choices // w
    dx = choices % w
    x_coord = (cell_j * w + dx).astype(jnp.float32)
    y_coord = (cell_i * w + dy).astype(jnp.float32)
    kpts_ref[0] = jnp.concatenate([x_coord, y_coord], axis=0)    # [2, TN]

    # ---- RIPE border filter * acceptance mask ---------------------------------
    f_all = ((x_coord >= 16.0) & (y_coord >= 16.0)
             & (x_coord < float(W - 16)) & (y_coord < float(H - 16)))
    mask_ref[0] = ((accepted > 0.0) & f_all).astype(jnp.int32)

    lsel_ref[0] = logits_sel


def detector_pallas(grid_logits, gumbel, u2, H, W, window):
    # grid_logits, gumbel: [B, w*w, N] f32,  u2: [B, 1, N] f32
    B, WW, N = grid_logits.shape
    Wc = W // window
    TN = _pick_lane_tile(N, max_tile=4096)
    kernel = functools.partial(_detector_kernel, Wc=Wc, w=window, H=H, W=W, TN=TN)

    def blk(rows):
        return pl.BlockSpec((1, rows, TN), lambda b_, t_: (b_, 0, t_))

    out_shape = (
        jax.ShapeDtypeStruct((B, 2, N), jnp.float32),   # keypoints (x; y)
        jax.ShapeDtypeStruct((B, 1, N), jnp.float32),   # log_probs
        jax.ShapeDtypeStruct((B, 1, N), jnp.int32),     # mask (accepted & border)
        jax.ShapeDtypeStruct((B, 1, N), jnp.float32),   # logits_selected
    )
    return pl.pallas_call(
        kernel,
        out_shape=out_shape,
        grid_spec=pltpu.PrefetchScalarGridSpec(
            num_scalar_prefetch=0,
            grid=(B, N // TN),
            in_specs=[blk(WW), blk(WW), blk(1)],
            out_specs=(blk(2), blk(1), blk(1), blk(1)),
        ),
        compiler_params=pltpu.CompilerParams(
            dimension_semantics=("parallel", "parallel"),
            vmem_limit_bytes=_VMEM_LIMIT),
    )(grid_logits, gumbel, u2)


# ----------------------------------------------------------------------------
# RIPE.forward (training=True path)
# ----------------------------------------------------------------------------
def ripe_forward(params, x, mask_padding, seed=0, training=True):
    B, C, H, W = x.shape
    HW = H * W
    x_flat = x.reshape(B, C, HW).astype(jnp.bfloat16)

    # fused synthetic net: [heatmap ; coarse descriptors] in one 1x1-conv pass
    w_all = jnp.concatenate([params["w_heat"], params["w_desc"]], axis=0).astype(jnp.bfloat16)
    b_all = jnp.concatenate([params["b_heat"], params["b_desc"]], axis=0).astype(jnp.float32)
    y = conv1x1_fused(x_flat, w_all, b_all)                 # [B, 1+Ddesc, HW] f32
    heatmap = y[:, :1].reshape(B, 1, H, W)
    desc = y[:, 1:].reshape(B, -1, H, W)
    out = {"heatmap": heatmap, "coarse_descs": [desc]}
    # non_linearity_dect = Identity

    if not training:
        return out

    w = WINDOW
    Hc, Wc = H // w, W // w
    N = Hc * Wc
    WW = w * w

    # transposed gridify: N ends up on the lane axis
    grid_logits = gridify_T(heatmap, w)[:, 0]               # [B, WW, N]
    mpad_min = jnp.min(gridify_T(mask_padding.astype(jnp.float32), w)[:, 0], axis=1)  # [B, N]

    # sampling noise generated host-side (Categorical via Gumbel-max, Bernoulli via uniform)
    key = jax.random.PRNGKey(seed)
    kg, kb = jax.random.split(key)
    gumbel = jax.random.gumbel(kg, (B, WW, N), jnp.float32)
    u2 = jax.random.uniform(kb, (B, 1, N), jnp.float32,
                            minval=1e-7, maxval=1.0 - 1e-7)

    kpts_t, logp, mask, lsel = detector_pallas(grid_logits, gumbel, u2, H, W, w)

    return (
        jnp.transpose(kpts_t, (0, 2, 1)),        # [B, N, 2] float (x, y)
        logp[:, 0],                              # [B, N]
        mask[:, 0].astype(bool),                 # [B, N]
        mpad_min > 0.5,                          # [B, N]  (bool padding mask)
        lsel[:, 0],                              # [B, N]
        out,
    )


# ----------------------------------------------------------------------------
if __name__ == "__main__":
    key = jax.random.PRNGKey(0)
    B, C, H, W = 2, 4, 64, 64
    Ddesc = 16

    kx, kw1, kw2 = jax.random.split(key, 3)
    x = jax.random.normal(kx, (B, C, H, W), jnp.float32)
    params = {
        "w_heat": 0.1 * jax.random.normal(kw1, (1, C), jnp.float32),
        "b_heat": jnp.zeros((1, 1), jnp.float32),
        "w_desc": 0.1 * jax.random.normal(kw2, (Ddesc, C), jnp.float32),
        "b_desc": jnp.zeros((Ddesc, 1), jnp.float32),
    }
    mask_padding = jnp.ones((B, 1, H, W), jnp.float32)  # all pixels valid

    outs = ripe_forward(params, x, mask_padding, seed=0, training=True)
    outs = jax.block_until_ready(outs)
    kpts, logp, mask, mpad, lsel, out = outs

    N = (H // WINDOW) * (W // WINDOW)
    assert kpts.shape == (B, N, 2)
    assert logp.shape == (B, N) and lsel.shape == (B, N)
    assert mask.shape == (B, N) and mpad.shape == (B, N)
    assert out["heatmap"].shape == (B, 1, H, W)
    assert out["coarse_descs"][0].shape == (B, Ddesc, H, W)
    assert bool(jnp.all(jnp.isfinite(logp)))
    assert bool(jnp.all(mpad))  # mask_padding is all-ones -> window-min all True
    # keypoints must lie inside their 8x8 window grid
    assert bool(jnp.all((kpts[..., 0] >= 0) & (kpts[..., 0] < W)))
    assert bool(jnp.all((kpts[..., 1] >= 0) & (kpts[..., 1] < H)))
    # every accepted keypoint must respect the 16-pixel border filter
    kx_ = kpts[..., 0]
    ky_ = kpts[..., 1]
    inside = (kx_ >= 16) & (ky_ >= 16) & (kx_ < W - 16) & (ky_ < H - 16)
    assert bool(jnp.all(jnp.where(mask, inside, True)))

    print("KERNEL_OK")
</pallas_src>

<mosaic_0001>
module attributes {stable_mosaic.version = 11 : i64} {
  func.func @_conv1x1_kernel(%arg0: i32, %arg1: i32, %arg2: memref<1x4x4096xbf16, #tpu.memory_space<vmem>>, %arg3: memref<17x4xbf16, #tpu.memory_space<vmem>>, %arg4: memref<17x1xf32, #tpu.memory_space<vmem>>, %arg5: memref<1x17x4096xf32, #tpu.memory_space<vmem>>) attributes {dimension_semantics = [#tpu.dimension_semantics<parallel>, #tpu.dimension_semantics<parallel>], iteration_bounds = array<i64: 2, 1>, scalar_prefetch = 0 : i64, scratch_operands = 0 : i64, tpu.core_type = #tpu.core_type<tc>, window_params = [{transform_indices = @transform_0, window_bounds = array<i64: 1, 4, 4096>}, {pipeline_mode = #tpu.pipeline_mode<synchronous>, transform_indices = @transform_1, window_bounds = array<i64: 17, 4>}, {pipeline_mode = #tpu.pipeline_mode<synchronous>, transform_indices = @transform_2, window_bounds = array<i64: 17, 1>}, {transform_indices = @transform_3, window_bounds = array<i64: 1, 17, 4096>}]} {
    %c0 = arith.constant 0 : index
    %c0_0 = arith.constant 0 : index
    %0 = vector.load %arg3[%c0, %c0_0] : memref<17x4xbf16, #tpu.memory_space<vmem>>, vector<17x4xbf16>
    %c0_1 = arith.constant 0 : index
    %c0_2 = arith.constant 0 : index
    %c0_3 = arith.constant 0 : index
    %1 = vector.load %arg2[%c0_1, %c0_2, %c0_3] : memref<1x4x4096xbf16, #tpu.memory_space<vmem>>, vector<1x4x4096xbf16>
    %2 = vector.shape_cast %1 : vector<1x4x4096xbf16> to vector<4x4096xbf16>
    %cst = arith.constant dense<0.000000e+00> : vector<17x4096xf32>
    %3 = tpu.matmul %0, %2, %cst {dimension_numbers = #tpu.dot_dimension_numbers<[1], [0], [0], [1], [0, 0, 1, 1], [], []>} : vector<17x4xbf16>, vector<4x4096xbf16>, vector<17x4096xf32> -> vector<17x4096xf32>
    %c0_4 = arith.constant 0 : index
    %c0_5 = arith.constant 0 : index
    %4 = vector.load %arg4[%c0_4, %c0_5] : memref<17x1xf32, #tpu.memory_space<vmem>>, vector<17x1xf32>
    %5 = vector.broadcast %4 : vector<17x1xf32> to vector<17x4096xf32>
    %6 = arith.addf %3, %5 : vector<17x4096xf32>
    %c0_6 = arith.constant 0 : index
    %c0_7 = arith.constant 0 : index
    %c0_8 = arith.constant 0 : index
    %7 = vector.load %arg5[%c0_6, %c0_7, %c0_8] : memref<1x17x4096xf32, #tpu.memory_space<vmem>>, vector<1x17x4096xf32>
    %8 = vector.shape_cast %7 : vector<1x17x4096xf32> to vector<17x4096xf32>
    %9 = vector.shape_cast %6 : vector<17x4096xf32> to vector<1x17x4096xf32>
    tpu.vector_store %arg5[%c0_6, %c0_7, %c0_8], %9 {strides = array<i32>} : memref<1x17x4096xf32, #tpu.memory_space<vmem>>, vector<1x17x4096xf32>,
    return
  }
  func.func @transform_0(%arg0: i32, %arg1: i32) -> (i32, i32, i32) {
    %c0_i32 = arith.constant 0 : i32
    %c0_i32_0 = arith.constant 0 : i32
    return %arg0, %c0_i32, %arg1 : i32, i32, i32
  }
  func.func @transform_1(%arg0: i32, %arg1: i32) -> (i32, i32) {
    %c0_i32 = arith.constant 0 : i32
    %c0_i32_0 = arith.constant 0 : i32
    %c0_i32_1 = arith.constant 0 : i32
    return %c0_i32, %c0_i32_0 : i32, i32
  }
  func.func @transform_2(%arg0: i32, %arg1: i32) -> (i32, i32) {
    %c0_i32 = arith.constant 0 : i32
    %c0_i32_0 = arith.constant 0 : i32
    %c0_i32_1 = arith.constant 0 : i32
    return %c0_i32, %c0_i32_0 : i32, i32
  }
  func.func @transform_3(%arg0: i32, %arg1: i32) -> (i32, i32, i32) {
    %c0_i32 = arith.constant 0 : i32
    %c0_i32_0 = arith.constant 0 : i32
    return %arg0, %c0_i32, %arg1 : i32, i32, i32
  }
}

</mosaic_0001>

<bundles_post_ra>
// kernel: tpu_custom_call.1
= control target key start
LH: loop header
LB: loop body
LE: loop exit
PB: predicated region body
PF: predicated region fallthrough
CT: control target
= control target key end

     0   :  { %8 = vsyncpa [#allocation3], 0  ;;  %s2223_s0 = inlined_call_operand.hbm [shape: bf16[2,4,4096], index: 0, kind: input, shape index: {}]   ;;  %s2224_s1 = inlined_call_operand.vmem [shape: bf16[17,4], index: 1, kind: input, shape index: {}]   ;;  %s2225_s2 = inlined_call_operand.vmem [shape: f32[17,1], index: 2, kind: input, shape index: {}]   ;;  %s2226_s3 = inlined_call_operand.vmem [shape: f32[2,17,4096], index: 3, kind: output, shape index: {}]  }
   0x1   :  { %10 = vsyncpa [#allocation3 + $0x1], 0  ;;  %s1746_s12 = smov 0   ;;  %s1748_s13 = smov 0  }
   0x2   :  { %s1750_s14 = smov 0   ;;  %s1752_s15 = smov 0  }
   0x3   :  { %s1754_s16 = smov 0   ;;  %s1756_s17 = smov 0  }
   0x4 LB: > { %s1510_s18 = sadd.s32 4294967295, %s1721_s17   ;;  %s28_s19 = sadd.s32 1, %s1717_s16  ;;  %s1721_s17 = sphi %s1756_s17, %s16_s17   ;;  %s1717_s16 = sphi %s1754_s16, %s2234_s16   ;;  %s1713_s15 = sphi %s1752_s15, %s2233_s15   ;;  %s1709_s14 = sphi %s1750_s14, %s2232_s14   ;;  %s1705_s13 = sphi %s1748_s13, %s2231_s13   ;;  %s1701_s12 = sphi %s1746_s12, %s2230_s12  }
   0x5   : > { %p30_p0 = scmp.ge.s32.totalorder %s28_s19, 2  ;;  %s37_s20 = sadd.s32 1, %s1709_s14 }
   0x6   : > { %p44_p1 = scmp.ne.s32.totalorder %s1709_s14, %s1705_s13  ;;  %p45_p2 = scmp.eq.s32.totalorder %s1721_s17, 0 }
   0x7   : > { %s2236_s19 = smov (%p30_p0, %s28_s19), 0  ;;  %p50_p4 = scmp.ne.s32.totalorder %s1705_s13, %s1701_s12 }
   0x8   : > { %p1782_p3 = por %p45_p2, %p44_p1  ;;  %s32_s22 = ssub.s32 %s1717_s16, %s2236_s19 }
   0x9   : > { %p51_p5 = scmp.eq.s32.totalorder %s1510_s18, 0  ;;  %p35_p6 = scmp.eq.s32.totalorder %s32_s22, 0 }
   0xa   : > { %p1580_p8 = scmp.lt.s32.totalorder %s1721_s17, 2  ;;  %s150_s25 = sand.u32 1, %s1709_s14  }
   0xb   : > { %p1789_p7 = por %p51_p5, %p50_p4  ;;  %s1572_s26 = sshll.u32 %s1717_s16, 10 }
   0xc   : > { %s1795_s24 = scalar_select %p35_p6, %s1709_s14, %s37_s20  }
   0xd   : > { %s1514_s27 = sshll.u32 %s150_s25, 6  ;;  %s162_s30 = scalar_lea.hbm %s2223_s0, %s1572_s26 }
   0xe   : > { %s154_s4 = scalar_lea.vmem [#allocation2], %s1514_s27  ;;  %p1804_p9 = pnand %p1580_p8, %p1782_p3 }
   0xf   : > { %s164_s5 = sshll.u32 %s154_s4, 4  ;;  %p1517_p10 = scmp.ge.s32.totalorder %s1721_s17, 1  ;;  %s165_s5 = int_to_ptr.vmem [resolvable:$true] %s164_s5 }
  0x10   : > { %p169_p11 = scmp.lt.s32.totalorder %s1721_s17, 3  ;;  %s151_s7 = scalar_lea.sflag [#allocation3], %s150_s25 }
  0x11   : > { %p1645_p12 = pneg %p1804_p9  ;;  %s1656_s8 = scalar_lea.vmem %s165_s5, 1024 }
  0x12   : > { %p1657_p13 = scmp.ne.s32.totalorder %s165_s5, %s1656_s8  ;;  %s1723_s9 = smov [#allocation2]  }
  0x13   : > { %s1661_s10 = sshll.u32 %s1723_s9, 4  ;;  %s1662_s10 = int_to_ptr.vmem [resolvable:$false] %s1661_s10 }
  0x14   : > { %p1659_p0 = pnand %p1657_p13, %p1645_p12  ;;  %s1663_s11 = scalar_lea.vmem %s1662_s10, 2048 }
  0x15   : > { %p1664_p2 = scmp.lt.s32.totalorder %s165_s5, %s1662_s10  ;;  %p1665_p3 = scmp.lt.s32.totalorder %s1663_s11, %s1656_s8 }
  0x16   : > { %p1660_p1 = pneg %p1659_p0 }
  0x17   : > { %p1666_p4 = por %p1665_p3, %p1664_p2 }
  0x19   : > { %p1667_p5 = pnand %p1666_p4, %p1660_p1 }
  0x1b   : > { %1670 = shalt.err (!%p1667_p5)
}
  0x1c   : > { %1579 = dma.hbm_to_vmem [thread:$0]  (!%p1804_p9), %s162_s30, 1024, %s165_s5, %s151_s7  }
  0x1d   : > { %p170_p6 = pnand %p1517_p10, %p169_p11 }
  0x1e   : > { %s175_s12 = sand.u32 (!%p170_p6), 1, %s1705_s13  }
  0x1f   : > { %173 = sbr.rel (%p170_p6) target bundleno = 371 (0x173), region = 32  ;;  %s1518_s18 = sshll.u32 (!%p170_p6), %s175_s12, 6 }
  0x20   : > { %s176_s20 = scalar_lea.sflag (!%p170_p6), [#allocation3], %s175_s12  ;;  %s1819_s21 = scalar_lea.vmem (!%p170_p6), [#allocation2], %s1518_s18 }
  0x24   : > { %1696 = dma.done.wait (%p1789_p7), %s176_s20, 1024  }
  0x25   : > { %1698 = vsyncadd (%p1789_p7), %s176_s20, 4294966272  ;;  %v267_v0 = vlaneseq  ;;  %v1724_v1 = vmov 1983009808   ;;  %v1725_v3 = vmov 0   ;;  %v221_v7 = vld [vmem:[%s1819_s21] sm:$0xff]  ;;  %vm406_vm0 = vcmask 1041408  }
  0x26   : > { %v265_v2 = vunpack.c.l.s4 %v1724_v1  ;;  %535 = vmatprep.mubr.bf16.mxu0 %v1725_v3  ;;  %586 = vmatprep.mubr.bf16.mxu1 %v1725_v3  ;;  %v263_v9 = vcombine.high %v221_v7, %v221_v7  ;;  %v222_v10 = vld [vmem:[%s1819_s21 + $0x8] sm:$0xff]  ;;  %v223_v13 = vld [vmem:[%s1819_s21 + $0x10] sm:$0xff]  ;;  %v229_v18 = vld [vmem:[%s2225_s2] sm:$0xff]  ;;  %vm399_vm1 = vcmask 31744   ;;  %p208_p7 = scmp.lt.s32.totalorder %s1713_s15, 1 }
  0x27   : > { %v268_v4 = vshrl.u32 %v267_v0, 7  ;;  %1631 = vset.pattern.permute.xlu0 %v1725_v3  ;;  %1632 = vset.pattern.permute.xlu1 %v1725_v3  ;;  %v280_v12 = vcombine.high %v222_v10, %v222_v10  ;;  %v297_v21 = vcombine.high %v223_v13, %v223_v13  ;;  %v231_v22 = vld [vmem:[%s2225_s2 + $0x10] sm:$0x1]  ;;  %v1851_v25 = vld [vmem:[%s2224_s1] sm:$0xff]   ;;  %v230_v26 = vld [vmem:[%s2225_s2 + $0x8] sm:$0xff] }
  0x28   : > { %v266_v5 = vunpack.c.0.s8 %v265_v2  ;;  %234 = vperm.xlu0 %1631, %v229_v18   ;;  %244 = vperm.xlu1 %1632, %v231_v22   ;;  %v1872_v33 = vld [vmem:[%s2224_s1 + $0x8] ss:$0 sps:$4 sm:$0x11]   ;;  %v224_v34 = vld [vmem:[%s1819_s21 + $0x18] sm:$0xff]  ;;  %v225_v42 = vld [vmem:[%s1819_s21 + $0x20] sm:$0xff]  ;;  %s2238_s15 = smov (!%p208_p7, %s1713_s15), 1 }
  0x29   : > { %v314_v35 = vcombine.high %v224_v34, %v224_v34  ;;  %v331_v43 = vcombine.high %v225_v42, %v225_v42  ;;  %v226_v50 = vld [vmem:[%s1819_s21 + $0x28] sm:$0xff]  ;;  %v227_v58 = vld [vmem:[%s1819_s21 + $0x30] sm:$0xff]  ;;  %v228_v2 = vld [vmem:[%s1819_s21 + $0x38] sm:$0xff]  ;;  %s1573_s6 = smul.u32 768, %s2238_s15 }
  0x2a   : > { %v1829_v6 = vsub.s32 %v266_v5, %v268_v4  ;;  %v348_v51 = vcombine.high %v226_v50, %v226_v50  ;;  %v365_v59 = vcombine.high %v227_v58, %v227_v58  ;;  %v382_v4 = vcombine.high %v228_v2, %v228_v2 }
  0x2b   : > { %s2007_s9 = scalar_lea.vmem %s2226_s3, %s1573_s6 }
  0x2c   : > { %v270_v8 = vrot.slane %v221_v7, %v1829_v6  ;;  %v287_v11 = vrot.slane %v222_v10, %v1829_v6  ;;  %v277_v16 = vrot.slane %v263_v9, %v1829_v6  ;;  %v304_v17 = vrot.slane %v223_v13, %v1829_v6  ;;  %239 = vperm.xlu0 %1631, %v230_v26  }
  0x2d   : > { %v294_v20 = vrot.slane %v280_v12, %v1829_v6  ;;  %v311_v28 = vrot.slane %v297_v21, %v1829_v6  ;;  %v321_v36 = vrot.slane %v224_v34, %v1829_v6  ;;  %v328_v37 = vrot.slane %v314_v35, %v1829_v6 }
  0x2e   : > { %v278_v14 = vcombine.high %v270_v8, %v270_v8  ;;  %v408_v15 = vsel %vm406_vm0, %v270_v8, 0  ;;  %v295_v19 = vcombine.high %v287_v11, %v287_v11  ;;  %v279_v23 = vcombine.high %v277_v16, %v277_v16 }
  0x2f   : > { %v414_v24 = vsel %vm406_vm0, %v277_v16, 0  ;;  %v296_v27 = vcombine.high %v294_v20, %v294_v20  ;;  %v420_v29 = vsel %vm406_vm0, %v287_v11, 0  ;;  %v312_v30 = vcombine.high %v304_v17, %v304_v17 }
  0x30   : > { %1522 = vmatprep.subr.msk.bf16.mxu0 %vm406_vm0, %v278_v14  ;;  %1525 = vmatprep.subr.msk.bf16.mxu1 %vm406_vm0, %v279_v23  ;;  %v426_v31 = vsel %vm406_vm0, %v294_v20, 0  ;;  %v313_v32 = vcombine.high %v311_v28, %v311_v28  ;;  %v432_v38 = vsel %vm406_vm0, %v304_v17, 0  ;;  %v329_v39 = vcombine.high %v321_v36, %v321_v36 }
  0x31   : > { %518 = vmatpush1.bf16.msra.mxu0 %v408_v15  ;;  %569 = vmatpush1.bf16.msra.mxu1 %v414_v24  ;;  %v438_v40 = vsel %vm406_vm0, %v311_v28, 0  ;;  %v330_v41 = vcombine.high %v328_v37, %v328_v37  ;;  %v338_v44 = vrot.slane %v225_v42, %v1829_v6  ;;  %v345_v45 = vrot.slane %v331_v43, %v1829_v6 }
  0x32   : > { %1528 = vmatprep.subr.msk.bf16.mxu0 %vm406_vm0, %v295_v19  ;;  %1531 = vmatprep.subr.msk.bf16.mxu1 %vm406_vm0, %v296_v27  ;;  %v444_v46 = vsel %vm406_vm0, %v321_v36, 0  ;;  %v450_v48 = vsel %vm406_vm0, %v328_v37, 0  ;;  %v355_v52 = vrot.slane %v226_v50, %v1829_v6  ;;  %v362_v53 = vrot.slane %v348_v51, %v1829_v6 }
  0x33   : > { %v346_v47 = vcombine.high %v338_v44, %v338_v44  ;;  %v347_v49 = vcombine.high %v345_v45, %v345_v45  ;;  %v456_v54 = vsel %vm406_vm0, %v338_v44, 0  ;;  %v462_v56 = vsel %vm406_vm0, %v345_v45, 0 }
  0x34   : > { %1523 = vmatmul.mubr.msk.bf16.vlgmr.msra.gmra.mxu0 %vm399_vm1, %v1851_v25  ;;  %1526 = vmatmul.mubr.msk.bf16.vlgmr.msra.gmra.mxu1 %vm399_vm1, %v1851_v25  ;;  %v363_v55 = vcombine.high %v355_v52, %v355_v52  ;;  %v364_v57 = vcombine.high %v362_v53, %v362_v53  ;;  %v372_v60 = vrot.slane %v227_v58, %v1829_v6  ;;  %v468_v62 = vsel %vm406_vm0, %v355_v52, 0 }
  0x35   : > { %620 = vmatpush1.bf16.msra.mxu0 %v420_v29  ;;  %545 = vmatprep.mubr.bf16.mxu0 %v1725_v3  ;;  %v379_v61 = vrot.slane %v365_v59, %v1829_v6  ;;  %v474_v0 = vsel %vm406_vm0, %v362_v53, 0  ;;  %v389_v5 = vrot.slane %v228_v2, %v1829_v6  ;;  %v396_v7 = vrot.slane %v382_v4, %v1829_v6 }
  0x36   : > { %1534 = vmatprep.subr.msk.bf16.mxu0 %vm406_vm0, %v312_v30  ;;  %671 = vmatpush1.bf16.msra.mxu1 %v426_v31  ;;  %v380_v63 = vcombine.high %v372_v60, %v372_v60  ;;  %v480_v8 = vsel %vm406_vm0, %v372_v60, 0 }
  0x37   : > { %596 = vmatprep.mubr.bf16.mxu1 %v1725_v3  ;;  %1537 = vmatprep.subr.msk.bf16.mxu1 %vm406_vm0, %v313_v32  ;;  %v381_v1 = vcombine.high %v379_v61, %v379_v61  ;;  %v397_v9 = vcombine.high %v389_v5, %v389_v5  ;;  %v486_v10 = vsel %vm406_vm0, %v379_v61, 0  ;;  %v398_v11 = vcombine.high %v396_v7, %v396_v7 }
  0x38   : > { %v492_v6 = vsel %vm406_vm0, %v389_v5, 0  ;;  %v498_v12 = vsel %vm406_vm0, %v396_v7, 0 }
  0x3c   : > { %1524 = vmatmul.mubr.msk.bf16.gmra.mxu0 %vm399_vm1, %v1872_v33  ;;  %1527 = vmatmul.mubr.msk.bf16.gmra.mxu1 %vm399_vm1, %v1872_v33 }
  0x3d   : > { %637 = vmatprep.mubr.bf16.mxu0 %v1725_v3  ;;  %688 = vmatprep.mubr.bf16.mxu1 %v1725_v3 }
  0x44   : > { %1529 = vmatmul.mubr.msk.bf16.vlgmr.msra.gmra.mxu0 %vm399_vm1, %v1851_v25  ;;  %1532 = vmatmul.mubr.msk.bf16.vlgmr.msra.gmra.mxu1 %vm399_vm1, %v1851_v25 }
  0x45   : > { %722 = vmatpush1.bf16.msra.mxu0 %v432_v38  ;;  %647 = vmatprep.mubr.bf16.mxu0 %v1725_v3 }
  0x46   : > { %1540 = vmatprep.subr.msk.bf16.mxu0 %vm406_vm0, %v329_v39  ;;  %773 = vmatpush1.bf16.msra.mxu1 %v438_v40 }
  0x47   : > { %698 = vmatprep.mubr.bf16.mxu1 %v1725_v3  ;;  %1543 = vmatprep.subr.msk.bf16.mxu1 %vm406_vm0, %v330_v41 }
  0x4c   : > { %1530 = vmatmul.mubr.msk.bf16.gmra.mxu0 %vm399_vm1, %v1872_v33  ;;  %1533 = vmatmul.mubr.msk.bf16.gmra.mxu1 %vm399_vm1, %v1872_v33 }
  0x4d   : > { %739 = vmatprep.mubr.bf16.mxu0 %v1725_v3  ;;  %790 = vmatprep.mubr.bf16.mxu1 %v1725_v3 }
  0x54   : > { %1535 = vmatmul.mubr.msk.bf16.vlgmr.msra.gmra.mxu0 %vm399_vm1, %v1851_v25  ;;  %1538 = vmatmul.mubr.msk.bf16.vlgmr.msra.gmra.mxu1 %vm399_vm1, %v1851_v25 }
  0x55   : > { %824 = vmatpush1.bf16.msra.mxu0 %v444_v46  ;;  %749 = vmatprep.mubr.bf16.mxu0 %v1725_v3 }
  0x56   : > { %1546 = vmatprep.subr.msk.bf16.mxu0 %vm406_vm0, %v346_v47  ;;  %875 = vmatpush1.bf16.msra.mxu1 %v450_v48 }
  0x57   : > { %800 = vmatprep.mubr.bf16.mxu1 %v1725_v3  ;;  %1549 = vmatprep.subr.msk.bf16.mxu1 %vm406_vm0, %v347_v49 }
  0x5c   : > { %1536 = vmatmul.mubr.msk.bf16.gmra.mxu0 %vm399_vm1, %v1872_v33  ;;  %1539 = vmatmul.mubr.msk.bf16.gmra.mxu1 %vm399_vm1, %v1872_v33 }
  0x5d   : > { %841 = vmatprep.mubr.bf16.mxu0 %v1725_v3  ;;  %892 = vmatprep.mubr.bf16.mxu1 %v1725_v3 }
  0x64   : > { %1541 = vmatmul.mubr.msk.bf16.vlgmr.msra.gmra.mxu0 %vm399_vm1, %v1851_v25  ;;  %1544 = vmatmul.mubr.msk.bf16.vlgmr.msra.gmra.mxu1 %vm399_vm1, %v1851_v25 }
  0x65   : > { %926 = vmatpush1.bf16.msra.mxu0 %v456_v54  ;;  %851 = vmatprep.mubr.bf16.mxu0 %v1725_v3 }
  0x66   : > { %1552 = vmatprep.subr.msk.bf16.mxu0 %vm406_vm0, %v363_v55  ;;  %977 = vmatpush1.bf16.msra.mxu1 %v462_v56 }
  0x67   : > { %902 = vmatprep.mubr.bf16.mxu1 %v1725_v3  ;;  %1555 = vmatprep.subr.msk.bf16.mxu1 %vm406_vm0, %v364_v57 }
  0x6c   : > { %1542 = vmatmul.mubr.msk.bf16.gmra.mxu0 %vm399_vm1, %v1872_v33  ;;  %1545 = vmatmul.mubr.msk.bf16.gmra.mxu1 %vm399_vm1, %v1872_v33 }
  0x6d   : > { %943 = vmatprep.mubr.bf16.mxu0 %v1725_v3  ;;  %994 = vmatprep.mubr.bf16.mxu1 %v1725_v3 }
  0x74   : > { %1547 = vmatmul.mubr.msk.bf16.vlgmr.msra.gmra.mxu0 %vm399_vm1, %v1851_v25  ;;  %1550 = vmatmul.mubr.msk.bf16.vlgmr.msra.gmra.mxu1 %vm399_vm1, %v1851_v25 }
  0x75   : > { %1028 = vmatpush1.bf16.msra.mxu0 %v468_v62  ;;  %953 = vmatprep.mubr.bf16.mxu0 %v1725_v3 }
  0x76   : > { %1558 = vmatprep.subr.msk.bf16.mxu0 %vm406_vm0, %v380_v63  ;;  %1079 = vmatpush1.bf16.msra.mxu1 %v474_v0 }
  0x77   : > { %1004 = vmatprep.mubr.bf16.mxu1 %v1725_v3  ;;  %1561 = vmatprep.subr.msk.bf16.mxu1 %vm406_vm0, %v381_v1 }
  0x7c   : > { %1548 = vmatmul.mubr.msk.bf16.gmra.mxu0 %vm399_vm1, %v1872_v33  ;;  %1551 = vmatmul.mubr.msk.bf16.gmra.mxu1 %vm399_vm1, %v1872_v33 }
  0x7d   : > { %1045 = vmatprep.mubr.bf16.mxu0 %v1725_v3  ;;  %1096 = vmatprep.mubr.bf16.mxu1 %v1725_v3 }
  0x84   : > { %1553 = vmatmul.mubr.msk.bf16.vlgmr.msra.gmra.mxu0 %vm399_vm1, %v1851_v25  ;;  %1556 = vmatmul.mubr.msk.bf16.vlgmr.msra.gmra.mxu1 %vm399_vm1, %v1851_v25 }
  0x85   : > { %1130 = vmatpush1.bf16.msra.mxu0 %v480_v8  ;;  %1055 = vmatprep.mubr.bf16.mxu0 %v1725_v3 }
  0x86   : > { %1564 = vmatprep.subr.msk.bf16.mxu0 %vm406_vm0, %v397_v9  ;;  %1181 = vmatpush1.bf16.msra.mxu1 %v486_v10 }
  0x87   : > { %1106 = vmatprep.mubr.bf16.mxu1 %v1725_v3  ;;  %1567 = vmatprep.subr.msk.bf16.mxu1 %vm406_vm0, %v398_v11 }
  0x8c   : > { %1554 = vmatmul.mubr.msk.bf16.gmra.mxu0 %vm399_vm1, %v1872_v33  ;;  %1557 = vmatmul.mubr.msk.bf16.gmra.mxu1 %vm399_vm1, %v1872_v33 }
  0x8d   : > { %1147 = vmatprep.mubr.bf16.mxu0 %v1725_v3  ;;  %1198 = vmatprep.mubr.bf16.mxu1 %v1725_v3 }
  0x94   : > { %1559 = vmatmul.mubr.msk.bf16.vlgmr.msra.gmra.mxu0 %vm399_vm1, %v1851_v25  ;;  %1562 = vmatmul.mubr.msk.bf16.vlgmr.msra.gmra.mxu1 %vm399_vm1, %v1851_v25 }
  0x95   : > { %1232 = vmatpush1.bf16.msra.mxu0 %v492_v6  ;;  %1157 = vmatprep.mubr.bf16.mxu0 %v1725_v3 }
  0x96   : > { %1283 = vmatpush1.bf16.msra.mxu1 %v498_v12  ;;  %1208 = vmatprep.mubr.bf16.mxu1 %v1725_v3 }
  0x9c   : > { %1560 = vmatmul.mubr.msk.bf16.gmra.mxu0 %vm399_vm1, %v1872_v33  ;;  %1563 = vmatmul.mubr.msk.bf16.gmra.mxu1 %vm399_vm1, %v1872_v33 }
  0x9d   : > { %1249 = vmatprep.mubr.bf16.mxu0 %v1725_v3  ;;  %1300 = vmatprep.mubr.bf16.mxu1 %v1725_v3 }
  0xa3   : > { %v2002_v13 = vpop.permute.xlu0 %234  ;;  %v2019_v24 = vpop.permute.xlu1 %244 }
  0xa4   : > { %1565 = vmatmul.mubr.msk.bf16.vlgmr.msra.gmra.mxu0 %vm399_vm1, %v1851_v25  ;;  %1568 = vmatmul.mubr.msk.bf16.vlgmr.msra.gmra.mxu1 %vm399_vm1, %v1851_v25 }
  0xa5   : > { %1259 = vmatprep.mubr.bf16.mxu0 %v1725_v3  ;;  %1310 = vmatprep.mubr.bf16.mxu1 %v1725_v3 }
  0xa7   : > { %v2010_v15 = vpop.permute.xlu0 %239 }
  0xac   : > { %1566 = vmatmul.mubr.msk.bf16.gmra.mxu0 %vm399_vm1, %v1872_v33  ;;  %1569 = vmatmul.mubr.msk.bf16.gmra.mxu1 %vm399_vm1, %v1872_v33 }
  0xf4   : > { %v537_v3 = vpop.f32.mrf.mxu0  ;;  %v588_v17 = vpop.f32.mrf.mxu1 }
  0xf5   : > { %v538_v14 = vadd.f32 %v537_v3, %v2002_v13  ;;  %v589_v19 = vadd.f32 %v588_v17, %v2002_v13 }
  0xf6   : > { %v539_v16 = vpop.f32.mrf.mxu0  ;;  %v590_v21 = vpop.f32.mrf.mxu1 }
  0xf7   : > { %1319 = vst [vmem:[%s2007_s9] sm:$0xff] %v538_v14  ;;  %v540_v18 = vadd.f32 %v539_v16, %v2002_v13  ;;  %1321 = vst [vmem:[%s2007_s9 + $0x10] sm:$0xff] %v589_v19  ;;  %v591_v23 = vadd.f32 %v590_v21, %v2002_v13 }
  0xf8   : > { %v541_v20 = vpop.f32.mrf.mxu0  ;;  %v592_v26 = vpop.f32.mrf.mxu1 }
  0xf9   : > { %1320 = vst [vmem:[%s2007_s9 + $0x8] sm:$0xff] %v540_v18  ;;  %v542_v22 = vadd.f32 %v541_v20, %v2010_v15  ;;  %1322 = vst [vmem:[%s2007_s9 + $0x18] sm:$0xff] %v591_v23  ;;  %v593_v28 = vadd.f32 %v592_v26, %v2010_v15 }
  0xfa   : > { %v543_v25 = vpop.f32.mrf.mxu0  ;;  %v594_v30 = vpop.f32.mrf.mxu1 }
  0xfb   : > { %1351 = vst [vmem:[%s2007_s9 + $0x100] sm:$0xff] %v542_v22  ;;  %v544_v27 = vadd.f32 %v543_v25, %v2010_v15  ;;  %1353 = vst [vmem:[%s2007_s9 + $0x110] sm:$0xff] %v593_v28  ;;  %v595_v31 = vadd.f32 %v594_v30, %v2010_v15 }
  0xfc   : > { %v547_v29 = vpop.f32.mrf.mxu0  ;;  %v598_v34 = vpop.f32.mrf.mxu1 }
  0xfd   : > { %1352 = vst [vmem:[%s2007_s9 + $0x108] sm:$0xff] %v544_v27  ;;  %v548_v32 = vadd.f32 %v547_v29, %v2019_v24  ;;  %1354 = vst [vmem:[%s2007_s9 + $0x118] sm:$0xff] %v595_v31  ;;  %v599_v36 = vadd.f32 %v598_v34, %v2019_v24 }
  0xfe   : > { %v549_v33 = vpop.f32.mrf.mxu0  ;;  %v600_v38 = vpop.f32.mrf.mxu1 }
  0xff   : > { %v550_v35 = vadd.f32 %v549_v33, %v2019_v24  ;;  %1383 = vst [vmem:[%s2007_s9 + $0x200] sm:$0x1] %v548_v32  ;;  %1385 = vst [vmem:[%s2007_s9 + $0x210] sm:$0x1] %v599_v36  ;;  %v601_v39 = vadd.f32 %v600_v38, %v2019_v24 }
 0x100   : > { %v551_v37 = vpop.f32.mrf.mxu0  ;;  %v602_v41 = vpop.f32.mrf.mxu1 }
 0x101   : > { %1384 = vst [vmem:[%s2007_s9 + $0x208] sm:$0x1] %v550_v35  ;;  %1386 = vst [vmem:[%s2007_s9 + $0x218] sm:$0x1] %v601_v39 }
 0x102   : > { %v552_v40 = vpop.f32.mrf.mxu0  ;;  %v603_v42 = vpop.f32.mrf.mxu1 }
 0x104   : > { %v639_v43 = vpop.f32.mrf.mxu0  ;;  %v690_v46 = vpop.f32.mrf.mxu1 }
 0x105   : > { %v640_v44 = vadd.f32 %v639_v43, %v2002_v13  ;;  %v691_v48 = vadd.f32 %v690_v46, %v2002_v13 }
 0x106   : > { %v641_v45 = vpop.f32.mrf.mxu0  ;;  %v692_v50 = vpop.f32.mrf.mxu1 }
 0x107   : > { %1323 = vst [vmem:[%s2007_s9 + $0x20] sm:$0xff] %v640_v44  ;;  %v642_v47 = vadd.f32 %v641_v45, %v2002_v13  ;;  %1325 = vst [vmem:[%s2007_s9 + $0x30] sm:$0xff] %v691_v48  ;;  %v693_v52 = vadd.f32 %v692_v50, %v2002_v13 }
 0x108   : > { %v643_v49 = vpop.f32.mrf.mxu0  ;;  %v694_v54 = vpop.f32.mrf.mxu1 }
 0x109   : > { %1324 = vst [vmem:[%s2007_s9 + $0x28] sm:$0xff] %v642_v47  ;;  %v644_v51 = vadd.f32 %v643_v49, %v2010_v15  ;;  %1326 = vst [vmem:[%s2007_s9 + $0x38] sm:$0xff] %v693_v52  ;;  %v695_v56 = vadd.f32 %v694_v54, %v2010_v15 }
 0x10a   : > { %v645_v53 = vpop.f32.mrf.mxu0  ;;  %v696_v58 = vpop.f32.mrf.mxu1 }
 0x10b   : > { %1355 = vst [vmem:[%s2007_s9 + $0x120] sm:$0xff] %v644_v51  ;;  %v646_v55 = vadd.f32 %v645_v53, %v2010_v15  ;;  %1357 = vst [vmem:[%s2007_s9 + $0x130] sm:$0xff] %v695_v56  ;;  %v697_v60 = vadd.f32 %v696_v58, %v2010_v15 }
 0x10c   : > { %v649_v57 = vpop.f32.mrf.mxu0  ;;  %v700_v62 = vpop.f32.mrf.mxu1 }
 0x10d   : > { %1356 = vst [vmem:[%s2007_s9 + $0x128] sm:$0xff] %v646_v55  ;;  %v650_v59 = vadd.f32 %v649_v57, %v2019_v24  ;;  %1358 = vst [vmem:[%s2007_s9 + $0x138] sm:$0xff] %v697_v60  ;;  %v701_v0 = vadd.f32 %v700_v62, %v2019_v24 }
 0x10e   : > { %v651_v61 = vpop.f32.mrf.mxu0  ;;  %v702_v2 = vpop.f32.mrf.mxu1 }
 0x10f   : > { %1387 = vst [vmem:[%s2007_s9 + $0x220] sm:$0x1] %v650_v59  ;;  %v652_v63 = vadd.f32 %v651_v61, %v2019_v24  ;;  %1389 = vst [vmem:[%s2007_s9 + $0x230] sm:$0x1] %v701_v0  ;;  %v703_v4 = vadd.f32 %v702_v2, %v2019_v24 }
 0x110   : > { %v653_v1 = vpop.f32.mrf.mxu0  ;;  %v704_v7 = vpop.f32.mrf.mxu1 }
 0x111   : > { %1388 = vst [vmem:[%s2007_s9 + $0x228] sm:$0x1] %v652_v63  ;;  %1390 = vst [vmem:[%s2007_s9 + $0x238] sm:$0x1] %v703_v4 }
 0x112   : > { %v654_v5 = vpop.f32.mrf.mxu0  ;;  %v705_v8 = vpop.f32.mrf.mxu1 }
 0x114   : > { %v741_v9 = vpop.f32.mrf.mxu0  ;;  %v792_v6 = vpop.f32.mrf.mxu1 }
 0x115   : > { %v742_v10 = vadd.f32 %v741_v9, %v2002_v13  ;;  %v793_v3 = vadd.f32 %v792_v6, %v2002_v13 }
 0x116   : > { %v743_v11 = vpop.f32.mrf.mxu0  ;;  %v794_v16 = vpop.f32.mrf.mxu1 }
 0x117   : > { %1327 = vst [vmem:[%s2007_s9 + $0x40] sm:$0xff] %v742_v10  ;;  %v744_v12 = vadd.f32 %v743_v11, %v2002_v13  ;;  %1329 = vst [vmem:[%s2007_s9 + $0x50] sm:$0xff] %v793_v3  ;;  %v795_v18 = vadd.f32 %v794_v16, %v2002_v13 }
 0x118   : > { %v745_v14 = vpop.f32.mrf.mxu0  ;;  %v796_v20 = vpop.f32.mrf.mxu1 }
 0x119   : > { %1328 = vst [vmem:[%s2007_s9 + $0x48] sm:$0xff] %v744_v12  ;;  %v746_v17 = vadd.f32 %v745_v14, %v2010_v15  ;;  %1330 = vst [vmem:[%s2007_s9 + $0x58] sm:$0xff] %v795_v18  ;;  %v797_v22 = vadd.f32 %v796_v20, %v2010_v15 }
 0x11a   : > { %v747_v19 = vpop.f32.mrf.mxu0  ;;  %v798_v25 = vpop.f32.mrf.mxu1 }
 0x11b   : > { %1359 = vst [vmem:[%s2007_s9 + $0x140] sm:$0xff] %v746_v17  ;;  %v748_v21 = vadd.f32 %v747_v19, %v2010_v15  ;;  %1361 = vst [vmem:[%s2007_s9 + $0x150] sm:$0xff] %v797_v22  ;;  %v799_v27 = vadd.f32 %v798_v25, %v2010_v15 }
 0x11c   : > { %v751_v23 = vpop.f32.mrf.mxu0  ;;  %v802_v29 = vpop.f32.mrf.mxu1 }
 0x11d   : > { %1360 = vst [vmem:[%s2007_s9 + $0x148] sm:$0xff] %v748_v21  ;;  %v752_v26 = vadd.f32 %v751_v23, %v2019_v24  ;;  %1362 = vst [vmem:[%s2007_s9 + $0x158] sm:$0xff] %v799_v27  ;;  %v803_v31 = vadd.f32 %v802_v29, %v2019_v24 }
 0x11e   : > { %v753_v28 = vpop.f32.mrf.mxu0  ;;  %v804_v33 = vpop.f32.mrf.mxu1 }
 0x11f   : > { %1391 = vst [vmem:[%s2007_s9 + $0x240] sm:$0x1] %v752_v26  ;;  %v754_v30 = vadd.f32 %v753_v28, %v2019_v24  ;;  %1393 = vst [vmem:[%s2007_s9 + $0x250] sm:$0x1] %v803_v31  ;;  %v805_v34 = vadd.f32 %v804_v33, %v2019_v24 }
 0x120   : > { %v755_v32 = vpop.f32.mrf.mxu0  ;;  %v806_v36 = vpop.f32.mrf.mxu1 }
 0x121   : > { %1392 = vst [vmem:[%s2007_s9 + $0x248] sm:$0x1] %v754_v30  ;;  %1394 = vst [vmem:[%s2007_s9 + $0x258] sm:$0x1] %v805_v34 }
 0x122   : > { %v756_v35 = vpop.f32.mrf.mxu0  ;;  %v807_v37 = vpop.f32.mrf.mxu1 }
 0x124   : > { %v843_v38 = vpop.f32.mrf.mxu0  ;;  %v894_v41 = vpop.f32.mrf.mxu1 }
 0x125   : > { %v844_v39 = vadd.f32 %v843_v38, %v2002_v13  ;;  %v895_v43 = vadd.f32 %v894_v41, %v2002_v13 }
 0x126   : > { %v845_v40 = vpop.f32.mrf.mxu0  ;;  %v896_v45 = vpop.f32.mrf.mxu1 }
 0x127   : > { %1331 = vst [vmem:[%s2007_s9 + $0x60] sm:$0xff] %v844_v39  ;;  %v846_v42 = vadd.f32 %v845_v40, %v2002_v13  ;;  %1333 = vst [vmem:[%s2007_s9 + $0x70] sm:$0xff] %v895_v43  ;;  %v897_v47 = vadd.f32 %v896_v45, %v2002_v13 }
 0x128   : > { %v847_v44 = vpop.f32.mrf.mxu0  ;;  %v898_v49 = vpop.f32.mrf.mxu1 }
 0x129   : > { %1332 = vst [vmem:[%s2007_s9 + $0x68] sm:$0xff] %v846_v42  ;;  %v848_v46 = vadd.f32 %v847_v44, %v2010_v15  ;;  %1334 = vst [vmem:[%s2007_s9 + $0x78] sm:$0xff] %v897_v47  ;;  %v899_v51 = vadd.f32 %v898_v49, %v2010_v15 }
 0x12a   : > { %v849_v48 = vpop.f32.mrf.mxu0  ;;  %v900_v53 = vpop.f32.mrf.mxu1 }
 0x12b   : > { %1363 = vst [vmem:[%s2007_s9 + $0x160] sm:$0xff] %v848_v46  ;;  %v850_v50 = vadd.f32 %v849_v48, %v2010_v15  ;;  %1365 = vst [vmem:[%s2007_s9 + $0x170] sm:$0xff] %v899_v51  ;;  %v901_v55 = vadd.f32 %v900_v53, %v2010_v15 }
 0x12c   : > { %v853_v52 = vpop.f32.mrf.mxu0  ;;  %v904_v57 = vpop.f32.mrf.mxu1 }
 0x12d   : > { %1364 = vst [vmem:[%s2007_s9 + $0x168] sm:$0xff] %v850_v50  ;;  %v854_v54 = vadd.f32 %v853_v52, %v2019_v24  ;;  %1366 = vst [vmem:[%s2007_s9 + $0x178] sm:$0xff] %v901_v55  ;;  %v905_v59 = vadd.f32 %v904_v57, %v2019_v24 }
 0x12e   : > { %v855_v56 = vpop.f32.mrf.mxu0  ;;  %v906_v61 = vpop.f32.mrf.mxu1 }
 0x12f   : > { %1395 = vst [vmem:[%s2007_s9 + $0x260] sm:$0x1] %v854_v54  ;;  %v856_v58 = vadd.f32 %v855_v56, %v2019_v24  ;;  %1397 = vst [vmem:[%s2007_s9 + $0x270] sm:$0x1] %v905_v59  ;;  %v907_v62 = vadd.f32 %v906_v61, %v2019_v24 }
 0x130   : > { %v857_v60 = vpop.f32.mrf.mxu0  ;;  %v908_v0 = vpop.f32.mrf.mxu1 }
 0x131   : > { %1396 = vst [vmem:[%s2007_s9 + $0x268] sm:$0x1] %v856_v58  ;;  %1398 = vst [vmem:[%s2007_s9 + $0x278] sm:$0x1] %v907_v62 }
 0x132   : > { %v858_v63 = vpop.f32.mrf.mxu0  ;;  %v909_v1 = vpop.f32.mrf.mxu1 }
 0x134   : > { %v945_v2 = vpop.f32.mrf.mxu0  ;;  %v996_v7 = vpop.f32.mrf.mxu1 }
 0x135   : > { %v946_v4 = vadd.f32 %v945_v2, %v2002_v13  ;;  %v997_v9 = vadd.f32 %v996_v7, %v2002_v13 }
 0x136   : > { %v947_v5 = vpop.f32.mrf.mxu0  ;;  %v998_v11 = vpop.f32.mrf.mxu1 }
 0x137   : > { %1335 = vst [vmem:[%s2007_s9 + $0x80] sm:$0xff] %v946_v4  ;;  %v948_v8 = vadd.f32 %v947_v5, %v2002_v13  ;;  %1337 = vst [vmem:[%s2007_s9 + $0x90] sm:$0xff] %v997_v9  ;;  %v999_v12 = vadd.f32 %v998_v11, %v2002_v13 }
 0x138   : > { %v949_v10 = vpop.f32.mrf.mxu0  ;;  %v1000_v14 = vpop.f32.mrf.mxu1 }
 0x139   : > { %1336 = vst [vmem:[%s2007_s9 + $0x88] sm:$0xff] %v948_v8  ;;  %v950_v6 = vadd.f32 %v949_v10, %v2010_v15  ;;  %1338 = vst [vmem:[%s2007_s9 + $0x98] sm:$0xff] %v999_v12  ;;  %v1001_v17 = vadd.f32 %v1000_v14, %v2010_v15 }
 0x13a   : > { %v951_v3 = vpop.f32.mrf.mxu0  ;;  %v1002_v19 = vpop.f32.mrf.mxu1 }
 0x13b   : > { %1367 = vst [vmem:[%s2007_s9 + $0x180] sm:$0xff] %v950_v6  ;;  %v952_v16 = vadd.f32 %v951_v3, %v2010_v15  ;;  %1369 = vst [vmem:[%s2007_s9 + $0x190] sm:$0xff] %v1001_v17  ;;  %v1003_v21 = vadd.f32 %v1002_v19, %v2010_v15 }
 0x13c   : > { %v955_v18 = vpop.f32.mrf.mxu0  ;;  %v1006_v23 = vpop.f32.mrf.mxu1 }
 0x13d   : > { %1368 = vst [vmem:[%s2007_s9 + $0x188] sm:$0xff] %v952_v16  ;;  %v956_v20 = vadd.f32 %v955_v18, %v2019_v24  ;;  %1370 = vst [vmem:[%s2007_s9 + $0x198] sm:$0xff] %v1003_v21  ;;  %v1007_v26 = vadd.f32 %v1006_v23, %v2019_v24 }
 0x13e   : > { %v957_v22 = vpop.f32.mrf.mxu0  ;;  %v1008_v28 = vpop.f32.mrf.mxu1 }
 0x13f   : > { %1399 = vst [vmem:[%s2007_s9 + $0x280] sm:$0x1] %v956_v20  ;;  %v958_v25 = vadd.f32 %v957_v22, %v2019_v24  ;;  %1401 = vst [vmem:[%s2007_s9 + $0x290] sm:$0x1] %v1007_v26  ;;  %v1009_v29 = vadd.f32 %v1008_v28, %v2019_v24 }
 0x140   : > { %v959_v27 = vpop.f32.mrf.mxu0  ;;  %v1010_v31 = vpop.f32.mrf.mxu1 }
 0x141   : > { %1400 = vst [vmem:[%s2007_s9 + $0x288] sm:$0x1] %v958_v25  ;;  %1402 = vst [vmem:[%s2007_s9 + $0x298] sm:$0x1] %v1009_v29 }
 0x142   : > { %v960_v30 = vpop.f32.mrf.mxu0  ;;  %v1011_v32 = vpop.f32.mrf.mxu1 }
 0x144   : > { %v1047_v33 = vpop.f32.mrf.mxu0  ;;  %v1098_v36 = vpop.f32.mrf.mxu1 }
 0x145   : > { %v1048_v34 = vadd.f32 %v1047_v33, %v2002_v13  ;;  %v1099_v38 = vadd.f32 %v1098_v36, %v2002_v13 }
 0x146   : > { %v1049_v35 = vpop.f32.mrf.mxu0  ;;  %v1100_v40 = vpop.f32.mrf.mxu1 }
 0x147   : > { %1339 = vst [vmem:[%s2007_s9 + $0xa0] sm:$0xff] %v1048_v34  ;;  %v1050_v37 = vadd.f32 %v1049_v35, %v2002_v13  ;;  %1341 = vst [vmem:[%s2007_s9 + $0xb0] sm:$0xff] %v1099_v38  ;;  %v1101_v42 = vadd.f32 %v1100_v40, %v2002_v13 }
 0x148   : > { %v1051_v39 = vpop.f32.mrf.mxu0  ;;  %v1102_v44 = vpop.f32.mrf.mxu1 }
 0x149   : > { %1340 = vst [vmem:[%s2007_s9 + $0xa8] sm:$0xff] %v1050_v37  ;;  %v1052_v41 = vadd.f32 %v1051_v39, %v2010_v15  ;;  %1342 = vst [vmem:[%s2007_s9 + $0xb8] sm:$0xff] %v1101_v42  ;;  %v1103_v46 = vadd.f32 %v1102_v44, %v2010_v15 }
 0x14a   : > { %v1053_v43 = vpop.f32.mrf.mxu0  ;;  %v1104_v48 = vpop.f32.mrf.mxu1 }
 0x14b   : > { %1371 = vst [vmem:[%s2007_s9 + $0x1a0] sm:$0xff] %v1052_v41  ;;  %v1054_v45 = vadd.f32 %v1053_v43, %v2010_v15  ;;  %1373 = vst [vmem:[%s2007_s9 + $0x1b0] sm:$0xff] %v1103_v46  ;;  %v1105_v50 = vadd.f32 %v1104_v48, %v2010_v15 }
 0x14c   : > { %v1057_v47 = vpop.f32.mrf.mxu0  ;;  %v1108_v52 = vpop.f32.mrf.mxu1 }
 0x14d   : > { %1372 = vst [vmem:[%s2007_s9 + $0x1a8] sm:$0xff] %v1054_v45  ;;  %v1058_v49 = vadd.f32 %v1057_v47, %v2019_v24  ;;  %1374 = vst [vmem:[%s2007_s9 + $0x1b8] sm:$0xff] %v1105_v50  ;;  %v1109_v54 = vadd.f32 %v1108_v52, %v2019_v24 }
 0x14e   : > { %v1059_v51 = vpop.f32.mrf.mxu0  ;;  %v1110_v56 = vpop.f32.mrf.mxu1 }
 0x14f   : > { %1403 = vst [vmem:[%s2007_s9 + $0x2a0] sm:$0x1] %v1058_v49  ;;  %v1060_v53 = vadd.f32 %v1059_v51, %v2019_v24  ;;  %1405 = vst [vmem:[%s2007_s9 + $0x2b0] sm:$0x1] %v1109_v54  ;;  %v1111_v57 = vadd.f32 %v1110_v56, %v2019_v24 }
 0x150   : > { %v1061_v55 = vpop.f32.mrf.mxu0  ;;  %v1112_v59 = vpop.f32.mrf.mxu1 }
 0x151   : > { %1404 = vst [vmem:[%s2007_s9 + $0x2a8] sm:$0x1] %v1060_v53  ;;  %1406 = vst [vmem:[%s2007_s9 + $0x2b8] sm:$0x1] %v1111_v57 }
 0x152   : > { %v1062_v58 = vpop.f32.mrf.mxu0  ;;  %v1113_v60 = vpop.f32.mrf.mxu1 }
 0x154   : > { %v1149_v61 = vpop.f32.mrf.mxu0  ;;  %v1200_v0 = vpop.f32.mrf.mxu1 }
 0x155   : > { %v1150_v62 = vadd.f32 %v1149_v61, %v2002_v13  ;;  %v1201_v2 = vadd.f32 %v1200_v0, %v2002_v13 }
 0x156   : > { %v1151_v63 = vpop.f32.mrf.mxu0  ;;  %v1202_v5 = vpop.f32.mrf.mxu1 }
 0x157   : > { %1343 = vst [vmem:[%s2007_s9 + $0xc0] sm:$0xff] %v1150_v62  ;;  %v1152_v1 = vadd.f32 %v1151_v63, %v2002_v13  ;;  %1345 = vst [vmem:[%s2007_s9 + $0xd0] sm:$0xff] %v1201_v2  ;;  %v1203_v8 = vadd.f32 %v1202_v5, %v2002_v13 }
 0x158   : > { %v1153_v4 = vpop.f32.mrf.mxu0  ;;  %v1204_v10 = vpop.f32.mrf.mxu1 }
 0x159   : > { %1344 = vst [vmem:[%s2007_s9 + $0xc8] sm:$0xff] %v1152_v1  ;;  %v1154_v7 = vadd.f32 %v1153_v4, %v2010_v15  ;;  %1346 = vst [vmem:[%s2007_s9 + $0xd8] sm:$0xff] %v1203_v8  ;;  %v1205_v6 = vadd.f32 %v1204_v10, %v2010_v15 }
 0x15a   : > { %v1155_v9 = vpop.f32.mrf.mxu0  ;;  %v1206_v3 = vpop.f32.mrf.mxu1 }
 0x15b   : > { %1375 = vst [vmem:[%s2007_s9 + $0x1c0] sm:$0xff] %v1154_v7  ;;  %v1156_v11 = vadd.f32 %v1155_v9, %v2010_v15  ;;  %1377 = vst [vmem:[%s2007_s9 + $0x1d0] sm:$0xff] %v1205_v6  ;;  %v1207_v16 = vadd.f32 %v1206_v3, %v2010_v15 }
 0x15c   : > { %v1159_v12 = vpop.f32.mrf.mxu0  ;;  %v1210_v18 = vpop.f32.mrf.mxu1 }
 0x15d   : > { %1376 = vst [vmem:[%s2007_s9 + $0x1c8] sm:$0xff] %v1156_v11  ;;  %v1160_v14 = vadd.f32 %v1159_v12, %v2019_v24  ;;  %1378 = vst [vmem:[%s2007_s9 + $0x1d8] sm:$0xff] %v1207_v16  ;;  %v1211_v20 = vadd.f32 %v1210_v18, %v2019_v24 }
 0x15e   : > { %v1161_v17 = vpop.f32.mrf.mxu0  ;;  %v1212_v22 = vpop.f32.mrf.mxu1 }
 0x15f   : > { %1407 = vst [vmem:[%s2007_s9 + $0x2c0] sm:$0x1] %v1160_v14  ;;  %v1162_v19 = vadd.f32 %v1161_v17, %v2019_v24  ;;  %1409 = vst [vmem:[%s2007_s9 + $0x2d0] sm:$0x1] %v1211_v20  ;;  %v1213_v23 = vadd.f32 %v1212_v22, %v2019_v24 }
 0x160   : > { %v1163_v21 = vpop.f32.mrf.mxu0  ;;  %v1214_v26 = vpop.f32.mrf.mxu1 }
 0x161   : > { %1408 = vst [vmem:[%s2007_s9 + $0x2c8] sm:$0x1] %v1162_v19  ;;  %1410 = vst [vmem:[%s2007_s9 + $0x2d8] sm:$0x1] %v1213_v23 }
 0x162   : > { %v1164_v25 = vpop.f32.mrf.mxu0  ;;  %v1215_v27 = vpop.f32.mrf.mxu1 }
 0x164   : > { %v1251_v28 = vpop.f32.mrf.mxu0  ;;  %v1302_v31 = vpop.f32.mrf.mxu1 }
 0x165   : > { %v1252_v29 = vadd.f32 %v1251_v28, %v2002_v13  ;;  %v1303_v33 = vadd.f32 %v1302_v31, %v2002_v13 }
 0x166   : > { %v1253_v30 = vpop.f32.mrf.mxu0  ;;  %v1304_v35 = vpop.f32.mrf.mxu1 }
 0x167   : > { %1347 = vst [vmem:[%s2007_s9 + $0xe0] sm:$0xff] %v1252_v29  ;;  %v1254_v32 = vadd.f32 %v1253_v30, %v2002_v13  ;;  %1349 = vst [vmem:[%s2007_s9 + $0xf0] sm:$0xff] %v1303_v33  ;;  %v1305_v37 = vadd.f32 %v1304_v35, %v2002_v13 }
 0x168   : > { %v1255_v34 = vpop.f32.mrf.mxu0  ;;  %v1306_v39 = vpop.f32.mrf.mxu1 }
 0x169   : > { %1348 = vst [vmem:[%s2007_s9 + $0xe8] sm:$0xff] %v1254_v32  ;;  %v1256_v36 = vadd.f32 %v1255_v34, %v2010_v15  ;;  %1350 = vst [vmem:[%s2007_s9 + $0xf8] sm:$0xff] %v1305_v37  ;;  %v1307_v41 = vadd.f32 %v1306_v39, %v2010_v15 }
 0x16a   : > { %v1257_v38 = vpop.f32.mrf.mxu0  ;;  %v1308_v43 = vpop.f32.mrf.mxu1 }
 0x16b   : > { %1379 = vst [vmem:[%s2007_s9 + $0x1e0] sm:$0xff] %v1256_v36  ;;  %v1258_v40 = vadd.f32 %v1257_v38, %v2010_v15  ;;  %1381 = vst [vmem:[%s2007_s9 + $0x1f0] sm:$0xff] %v1307_v41  ;;  %v1309_v13 = vadd.f32 %v1308_v43, %v2010_v15 }
 0x16c   : > { %v1261_v42 = vpop.f32.mrf.mxu0  ;;  %v1312_v46 = vpop.f32.mrf.mxu1 }
 0x16d   : > { %1380 = vst [vmem:[%s2007_s9 + $0x1e8] sm:$0xff] %v1258_v40  ;;  %v1262_v44 = vadd.f32 %v1261_v42, %v2019_v24  ;;  %1382 = vst [vmem:[%s2007_s9 + $0x1f8] sm:$0xff] %v1309_v13  ;;  %v1313_v48 = vadd.f32 %v1312_v46, %v2019_v24 }
 0x16e   : > { %v1263_v45 = vpop.f32.mrf.mxu0  ;;  %v1314_v50 = vpop.f32.mrf.mxu1 }
 0x16f   : > { %1411 = vst [vmem:[%s2007_s9 + $0x2e0] sm:$0x1] %v1262_v44  ;;  %v1264_v47 = vadd.f32 %v1263_v45, %v2019_v24  ;;  %1413 = vst [vmem:[%s2007_s9 + $0x2f0] sm:$0x1] %v1313_v48  ;;  %v1315_v51 = vadd.f32 %v1314_v50, %v2019_v24 }
 0x170   : > { %v1265_v49 = vpop.f32.mrf.mxu0  ;;  %v1316_v53 = vpop.f32.mrf.mxu1 }
 0x171   : > { %1412 = vst [vmem:[%s2007_s9 + $0x2e8] sm:$0x1] %v1264_v47  ;;  %1414 = vst [vmem:[%s2007_s9 + $0x2f8] sm:$0x1] %v1315_v51 }
 0x172   : > { %v1266_v52 = vpop.f32.mrf.mxu0  ;;  %v1317_v54 = vpop.f32.mrf.mxu1 }
 0x173 PF: > { %s16_s17 = sadd.s32 1, %s1721_s17   ;;  %s2230_s12 = smov %s1705_s13 }
 0x174   : > { %p13_p8 = scmp.ge.s32.totalorder %s16_s17, 4   ;;  %s2231_s13 = smov %s1709_s14 }
 0x175   : > { %s2232_s14 = smov %s1795_s24  ;;  %s2233_s15 = smov %s1717_s16 }
 0x176   : > { %s2234_s16 = smov %s2236_s19  ;;  %15 = sbr.rel (!%p13_p8) target bundleno = 4 (0x4), region = 72 }
 0x17b   :  { %1445 = vsyncpa [#allocation3], 1 }
 0x17c   :  { %1447 = vsyncpa [#allocation3 + $0x1], 1 }

</bundles_post_ra>
